<compile_context>
chip_gen: v7x
topology: tpu7x:2x2x1
jax: 0.10.0
libtpu: 0.0.40
codegen_flags: <defaults>
</compile_context>

<pallas_src>
import math

import jax
import jax.numpy as jnp
import numpy as np
from jax.experimental import pallas as pl
from jax.experimental.pallas import tpu as pltpu


def generate_filter(start, end, size):
    """Same semantics as the PyTorch helper: band-pass mask on i+j."""
    return np.array(
        [[0.0 if (i + j > end or i + j < start) else 1.0 for j in range(size)]
         for i in range(size)],
        dtype=np.float32,
    )


def _filter_kernel(x_ref, filt_ref, o_ref):
    # x_ref:    (tile_rows, lane)  slab of rows, lane-dense
    # filt_ref: (1, lane)          pre-scaled filter, broadcast over rows
    o_ref[...] = (x_ref[...] * filt_ref[...]).astype(o_ref.dtype)


def _round_up(a, b):
    return (a + b - 1) // b * b


def filter_forward(x, base, learnable, *, norm=False, ft_num=None,
                   max_tile_rows=2048, min_pallas_bytes=1 << 20):
    """Pallas implementation of Filter.forward (use_learnable=True)."""
    B, C, S, S2 = x.shape
    assert S == S2 and base.shape == (S, S) and learnable.shape == (S, S)

    inv_ft_num = (1.0 / float(ft_num)) if norm else 1.0

    # Filter built + scaled once in f32 (only S*S elements), then cast to
    # x.dtype so the per-element kernel work is one native-dtype multiply.
    filt_f32 = (base.astype(jnp.float32)
                + (2.0 * jax.nn.sigmoid(learnable.astype(jnp.float32)) - 1.0))
    filt_flat = (filt_f32 * inv_ft_num).astype(x.dtype).reshape(-1)  # (S*S,)

    dsize = jnp.dtype(x.dtype).itemsize
    feat = S * S
    rows = B * C
    total = rows * feat

    # Tiny inputs: pallas_call is pure launch overhead; a fused jnp multiply
    # is strictly faster and fuses into the surrounding XLA graph.
    if total * dsize < min_pallas_bytes:
        return (x * filt_flat.reshape(S, S)).astype(x.dtype)

    # Lane-dense last dim: must be a multiple of 128 for unmasked stores.
    if feat % 128 == 0:
        lane, reps = feat, 1
    else:
        reps = 128 // math.gcd(feat, 128)          # lcm(feat, 128) // feat
        lane = feat * reps
        if rows % reps != 0 or lane > 8 * 128 * 4:
            lane, reps = feat, 1                   # fallback: correct, maybe masked
    n_rows = total // lane
    xr = x.reshape(n_rows, lane)
    filt_row = (jnp.tile(filt_flat, (reps,)) if reps > 1
                else filt_flat).reshape(1, lane)

    # Tile-rows choice:
    #  * never a single grid step when it can be split (v7x: 2 TCs share work
    #    only across grid steps),
    #  * cap at max_tile_rows (2 MiB f32 tiles -> double-buffered in+out stays
    #    well under every generation's scoped-VMEM limit).
    if n_rows * 2 <= 16:
        tile_rows = n_rows                         # too small to split legally
    elif n_rows <= max_tile_rows:
        tile_rows = _round_up(pl.cdiv(n_rows, 2), 8)
    else:
        tile_rows = max_tile_rows - (max_tile_rows % 8)

    # Make every tile full (unmasked stores): pad rows up, slice afterwards.
    n_rows_padded = _round_up(n_rows, tile_rows)
    if n_rows_padded != n_rows:
        xr = jnp.pad(xr, ((0, n_rows_padded - n_rows), (0, 0)))
    grid = (n_rows_padded // tile_rows,)

    tile_bytes = tile_rows * lane * dsize
    filt_bytes = lane * dsize
    # Explicit VMEM budget: double-buffered input + output tiles + filter,
    # plus slack for internal scratch. Well under 64 MiB (v7x physical).
    vmem_limit = max(2 * (2 * tile_bytes + filt_bytes) + (4 << 20), 16 << 20)

    out = pl.pallas_call(
        _filter_kernel,
        out_shape=jax.ShapeDtypeStruct((n_rows_padded, lane), x.dtype),
        grid_spec=pl.GridSpec(
            grid=grid,
            in_specs=[
                pl.BlockSpec((tile_rows, lane), lambda i: (i, 0)),   # x slab
                pl.BlockSpec((1, lane), lambda i: (0, 0)),           # filter
            ],
            out_specs=pl.BlockSpec((tile_rows, lane), lambda i: (i, 0)),
        ),
        compiler_params=pltpu.CompilerParams(
            dimension_semantics=("parallel",),
            vmem_limit_bytes=int(vmem_limit)),
        cost_estimate=pl.CostEstimate(
            flops=total,
            transcendentals=0,
            bytes_accessed=2 * total * dsize + lane * dsize),
    )(xr, filt_row)

    if n_rows_padded != n_rows:
        out = out[:n_rows]
    return out.reshape(B, C, S, S)


def filter_forward_ref(x, base, learnable, *, norm=False, ft_num=None):
    """Pure-JAX reference for correctness checking."""
    filt = base + (2.0 * jax.nn.sigmoid(learnable) - 1.0)
    y = x * filt
    if norm:
        y = y / ft_num
    return y


if __name__ == "__main__":
    # Module config: Filter(size=16, band_start=0, band_end=16,
    #                       use_learnable=True, norm=True)
    size = 16
    band_start, band_end = 0, size

    key = jax.random.PRNGKey(0)
    kx, kl, kx2 = jax.random.split(key, 3)

    base_np = generate_filter(band_start, band_end, size)
    base = jnp.asarray(base_np)
    learnable = 0.1 * jax.random.normal(kl, (size, size), dtype=jnp.float32)
    ft_num = float(base_np.sum())

    # 1) Module-sized input: [B, C, H, W] = [2, 4, 16, 16].
    #    min_pallas_bytes=0 forces the Pallas path even at this tiny size.
    x = jax.random.normal(kx, (2, 4, size, size), dtype=jnp.float32)
    y = filter_forward(x, base, learnable, norm=True, ft_num=ft_num,
                       min_pallas_bytes=0)
    y = jax.block_until_ready(y)
    y_ref = filter_forward_ref(x, base, learnable, norm=True, ft_num=ft_num)
    np.testing.assert_allclose(np.asarray(y), np.asarray(y_ref),
                               rtol=1e-6, atol=1e-6)

    # 2) Slightly larger input to exercise the multi-step (>=2 tile) grid.
    x2 = jax.random.normal(kx2, (4, 64, size, size), dtype=jnp.float32)
    y2 = filter_forward(x2, base, learnable, norm=True, ft_num=ft_num,
                        min_pallas_bytes=0)
    y2 = jax.block_until_ready(y2)
    y2_ref = filter_forward_ref(x2, base, learnable, norm=True, ft_num=ft_num)
    np.testing.assert_allclose(np.asarray(y2), np.asarray(y2_ref),
                               rtol=1e-6, atol=1e-6)

    print("KERNEL_OK")
</pallas_src>

<mosaic_0001>
module attributes {stable_mosaic.version = 11 : i64} {
  func.func @_filter_kernel(%arg0: i32, %arg1: memref<8x256xf32, #tpu.memory_space<vmem>>, %arg2: memref<1x256xf32, #tpu.memory_space<vmem>>, %arg3: memref<8x256xf32, #tpu.memory_space<vmem>>) attributes {dimension_semantics = [#tpu.dimension_semantics<parallel>], iteration_bounds = array<i64: 1>, scalar_prefetch = 0 : i64, scratch_operands = 0 : i64, tpu.core_type = #tpu.core_type<tc>, window_params = [{transform_indices = @transform_0, window_bounds = array<i64: 8, 256>}, {pipeline_mode = #tpu.pipeline_mode<synchronous>, transform_indices = @transform_1, window_bounds = array<i64: 1, 256>}, {transform_indices = @transform_2, window_bounds = array<i64: 8, 256>}]} {
    %c0 = arith.constant 0 : index
    %c0_0 = arith.constant 0 : index
    %0 = vector.load %arg1[%c0, %c0_0] : memref<8x256xf32, #tpu.memory_space<vmem>>, vector<8x256xf32>
    %c0_1 = arith.constant 0 : index
    %c0_2 = arith.constant 0 : index
    %1 = vector.load %arg2[%c0_1, %c0_2] : memref<1x256xf32, #tpu.memory_space<vmem>>, vector<1x256xf32>
    %2 = vector.broadcast %1 : vector<1x256xf32> to vector<8x256xf32>
    %3 = arith.mulf %0, %2 : vector<8x256xf32>
    %c0_3 = arith.constant 0 : index
    %c0_4 = arith.constant 0 : index
    %4 = vector.load %arg3[%c0_3, %c0_4] : memref<8x256xf32, #tpu.memory_space<vmem>>, vector<8x256xf32>
    tpu.vector_store %arg3[%c0_3, %c0_4], %3 {strides = array<i32>} : memref<8x256xf32, #tpu.memory_space<vmem>>, vector<8x256xf32>,
    return
  }
  func.func @transform_0(%arg0: i32) -> (i32, i32) {
    %c0_i32 = arith.constant 0 : i32
    %c0_i32_0 = arith.constant 0 : i32
    return %arg0, %c0_i32 : i32, i32
  }
  func.func @transform_1(%arg0: i32) -> (i32, i32) {
    %c0_i32 = arith.constant 0 : i32
    %c0_i32_0 = arith.constant 0 : i32
    %c0_i32_1 = arith.constant 0 : i32
    return %c0_i32, %c0_i32_0 : i32, i32
  }
  func.func @transform_2(%arg0: i32) -> (i32, i32) {
    %c0_i32 = arith.constant 0 : i32
    %c0_i32_0 = arith.constant 0 : i32
    return %arg0, %c0_i32 : i32, i32
  }
}

</mosaic_0001>

<bundles_post_ra>
// kernel: tpu_custom_call.1
= control target key start
LH: loop header
LB: loop body
LE: loop exit
PB: predicated region body
PF: predicated region fallthrough
CT: control target
= control target key end

     0   :  { %7 = vsyncpa [#allocation3], 0  ;;  %s151_s0 = inlined_call_operand.hbm [shape: f32[8,256], index: 0, kind: input, shape index: {}]   ;;  %s152_s1 = inlined_call_operand.vmem [shape: f32[1,256], index: 1, kind: input, shape index: {}]   ;;  %s153_s2 = inlined_call_operand.hbm [shape: f32[8,256], index: 2, kind: output, shape index: {}]  }
   0x1   :  { %8 = vsyncpa [#allocation4], 0  ;;  %s107_s9 = smov [#allocation2]   ;;  %s59_s13 = scalar_lea.hbm %s151_s0, 256 }
   0x2   :  { %s15_s10 = sshll.u32 %s107_s9, 4  ;;  %p60_p0 = scmp.ne.s32.totalorder %s151_s0, %s59_s13  ;;  %s16_s10 = int_to_ptr.vmem [resolvable:$true] %s15_s10 }
   0x3   :  { %p63_p1 = scmp.lt.u32.totalorder %s59_s13, %s151_s0 }
   0x5   :  { %p65_p2 = pnand %p63_p1, %p60_p0 }
   0x7   :  { %68 = shalt.err (!%p65_p2)
}
   0x8   :  { %s69_s18 = scalar_lea.vmem %s16_s10, 256  ;;  %p74_p4 = scmp.lt.s32.totalorder %s16_s10, %s16_s10 }
   0x9   :  { %p70_p3 = scmp.ne.s32.totalorder %s16_s10, %s69_s18  ;;  %p75_p5 = scmp.lt.s32.totalorder %s69_s18, %s69_s18 }
   0xb   :  { %p76_p6 = por %p75_p5, %p74_p4 }
   0xd   :  { %p77_p7 = pnand %p76_p6, %p70_p3 }
   0xf   :  { %80 = shalt.err (!%p77_p7)
}
  0x10   :  { %18 = dma.hbm_to_vmem [thread:$0]  %s151_s0, 256, %s16_s10, [#allocation3]  }
  0x11   :  { %103 = dma.done.wait [#allocation3], 256  }
  0x12   :  { %104 = vsyncadd [#allocation3], 4294967040  ;;  %v28_v0 = vlaneseq  ;;  %v24_v4 = vld [vmem:[#allocation2] sm:$0xff]  ;;  %v25_v6 = vld [vmem:[#allocation2 + $0x8] sm:$0xff]  ;;  %s108_s23 = smov [#allocation5]  }
  0x13   :  { %v26_v5 = vld [vmem:[%s152_s1] sm:$0x3]  ;;  %s48_s24 = sshll.u32 %s108_s23, 4  ;;  %s49_s24 = int_to_ptr.vmem [resolvable:$true] %s48_s24 }
  0x14   :  { %v29_v1 = vshrl.u32 %v28_v0, 7  ;;  %s81_s0 = scalar_lea.vmem %s49_s24, 256  ;;  %p86_p9 = scmp.lt.s32.totalorder %s49_s24, %s49_s24 }
  0x15   :  { %p82_p8 = scmp.ne.s32.totalorder %s49_s24, %s81_s0  ;;  %p87_p10 = scmp.lt.s32.totalorder %s81_s0, %s81_s0 }
  0x16   :  { %v30_v2 = vsub.s32 0, %v29_v1  ;;  %v34_v3 = vsub.s32 1, %v29_v1 }
  0x17   :  { %p88_p11 = por %p87_p10, %p86_p9 }
  0x18   :  { %v31_v7 = vrot.slane %v26_v5, %v30_v2  ;;  %v35_v8 = vrot.slane %v26_v5, %v34_v3 }
  0x19   :  { %p89_p12 = pnand %p88_p11, %p82_p8 }
  0x1a   :  { %v38_v9 = vmul.f32 %v31_v7, %v24_v4  ;;  %v39_v10 = vmul.f32 %v35_v8, %v25_v6 }
  0x1c   :  { %40 = vst [vmem:[#allocation5] sm:$0xff] %v38_v9  ;;  %41 = vst [vmem:[#allocation5 + $0x8] sm:$0xff] %v39_v10 }
  0x1d   :  { %92 = shalt.err (!%p89_p12)
}
  0x1e   :  { %s93_s1 = scalar_lea.hbm %s153_s2, 256 }
  0x1f   :  { %p94_p13 = scmp.ne.s32.totalorder %s153_s2, %s93_s1  ;;  %p97_p0 = scmp.lt.u32.totalorder %s93_s1, %s153_s2 }
  0x21   :  { %p99_p1 = pnand %p97_p0, %p94_p13 }
  0x23   :  { %102 = shalt.err (!%p99_p1)
}
  0x24   :  { %51 = dma.vmem_to_hbm [thread:$0]  %s49_s24, 256, %s153_s2, [#allocation4]  }
  0x25   :  { %105 = dma.done.wait [#allocation4], 256  }
  0x26   :  { %106 = vsyncadd [#allocation4], 4294967040 }
  0x27   :  { %55 = vsyncpa [#allocation3], 1 }
  0x28   :  { %56 = vsyncpa [#allocation4], 1 }

</bundles_post_ra>
